<compile_context>
chip_gen: v6e
topology: v6e:2x2x1
jax: 0.10.0
libtpu: 0.0.40
codegen_flags: <defaults>
</compile_context>

<pallas_src>
import functools

import jax
import jax.numpy as jnp
from jax.experimental import pallas as pl
from jax.experimental.pallas import tpu as pltpu

D_IN = 768      # input features (matches torch module default)
H1 = 256        # hidden 1 width
H2_RAW = 64     # logical hidden 2 width (matches torch module)
H2 = 128        # lane-padded hidden 2 width used inside the kernel


def _round_up(x, m):
    return ((x + m - 1) // m) * m


def _is_multi_core_chip():
    """True for parts with >1 TensorCore per chip sharing a grid (v7x)."""
    try:
        kind = jax.devices()[0].device_kind.lower()
    except Exception:  # pragma: no cover - defensive
        return False
    return ("v7" in kind) or ("7x" in kind)


def mlp_kernel(x_ref, w1_ref, b1_ref, w2_ref, b2_ref, w3_ref, b3_ref, o_ref):
    # Layer 1: x tile streamed in its HBM dtype (f32 or bf16); cast to bf16
    # here (hidden under the DMA), MXU matmul with f32 accumulation.
    xb = x_ref[...].astype(jnp.bfloat16)
    h1 = jnp.dot(xb, w1_ref[...], preferred_element_type=jnp.float32)
    h1 = jnp.maximum(h1 + b1_ref[...], 0.0)          # bias + ReLU in f32 (v5e-safe)
    # Dropout(0.3): identity in eval mode.

    # Layer 2 (hidden width padded 64 -> 128 so h2 stays lane-dense).
    h2 = jnp.dot(h1.astype(jnp.bfloat16), w2_ref[...],
                 preferred_element_type=jnp.float32)  # (tile_b, 128) f32
    h2 = jnp.maximum(h2 + b2_ref[...], 0.0)
    # Dropout(0.3): identity in eval mode.

    # Layer 3 (out_features=1): produce logits lane-major (1, tile_b) so the
    # output block is lane-dense (unmasked stores) and sigmoid runs on dense
    # vregs.  w3's padded columns (64..127) are zero; b3 is an SMEM scalar.
    logits = jnp.einsum("ok,bk->ob", w3_ref[...], h2,
                        preferred_element_type=jnp.float32) + b3_ref[0, 0]
    o_ref[...] = jax.nn.sigmoid(logits).reshape(o_ref.shape)   # (1, 1, tile_b)


@functools.partial(jax.jit, static_argnames=("tile_b",))
def mlp_classifier_forward(x, kernel_params, *, tile_b=512):
    """x: (B, 768) f32 or bf16.  kernel_params: output of prepare_params()."""
    w1, b1, w2, b2, w3, b3 = kernel_params
    B = x.shape[0]

    # Keep tile_b a multiple of 128 (lane-dense output, (16,128)-friendly x
    # sublanes) and clamp it for tiny batches so we don't over-pad.
    tile_b = _round_up(max(tile_b, 128), 128)
    tile_b = min(tile_b, _round_up(B, 128))
    n_tiles = pl.cdiv(B, tile_b)
    b_pad = n_tiles * tile_b
    if b_pad != B:                       # pad-free fast path when B % tile_b == 0
        x = jnp.pad(x, ((0, b_pad - B), (0, 0)))

    # Shard batch tiles across TensorCores on multi-core chips (v7x); plain
    # "parallel" is neutral on single-core v5e/v6e.
    if _is_multi_core_chip() and n_tiles >= 2:
        batch_sem = pltpu.CORE_PARALLEL
    else:
        batch_sem = pltpu.PARALLEL

    out = pl.pallas_call(
        mlp_kernel,
        out_shape=jax.ShapeDtypeStruct((n_tiles, 1, tile_b), jnp.float32),
        grid=(n_tiles,),
        in_specs=[
            pl.BlockSpec((tile_b, D_IN), lambda i: (i, 0)),     # x: pipelined tile
            pl.BlockSpec((D_IN, H1), lambda i: (0, 0)),         # w1 (bf16): resident
            pl.BlockSpec((1, H1), lambda i: (0, 0)),            # b1 (f32)
            pl.BlockSpec((H1, H2), lambda i: (0, 0)),           # w2 (bf16, padded)
            pl.BlockSpec((1, H2), lambda i: (0, 0)),            # b2 (f32, padded)
            pl.BlockSpec((1, H2), lambda i: (0, 0)),            # w3 row (f32, padded)
            pl.BlockSpec((1, 1), lambda i: (0, 0),
                         memory_space=pltpu.MemorySpace.SMEM),  # b3 scalar
        ],
        out_specs=pl.BlockSpec((1, 1, tile_b), lambda i: (i, 0, 0)),
        compiler_params=pltpu.CompilerParams(
            dimension_semantics=(batch_sem,)),
    )(x, w1, b1, w2, b2, w3, b3)

    probs = out.reshape(b_pad, 1)        # (n_tiles,1,tile_b) -> row-major (b_pad,1)
    if b_pad != B:
        probs = probs[:B]
    return probs


def init_params(key, input_dim=D_IN):
    """f32 params with the torch nn.Linear shapes in (in, out) layout."""
    k1, k2, k3, k4, k5, k6 = jax.random.split(key, 6)
    s = 0.02
    w1 = s * jax.random.normal(k1, (input_dim, H1), dtype=jnp.float32)
    b1 = s * jax.random.normal(k2, (H1,), dtype=jnp.float32)
    w2 = s * jax.random.normal(k3, (H1, H2_RAW), dtype=jnp.float32)
    b2 = s * jax.random.normal(k4, (H2_RAW,), dtype=jnp.float32)
    w3 = s * jax.random.normal(k5, (H2_RAW, 1), dtype=jnp.float32)
    b3 = s * jax.random.normal(k6, (1,), dtype=jnp.float32)
    return (w1, b1, w2, b2, w3, b3)


def prepare_params(params):
    """Pad hidden-2 to 128 lanes, cast matmul weights to bf16, reshape for the kernel."""
    w1, b1, w2, b2, w3, b3 = params
    w2p = jnp.pad(w2, ((0, 0), (0, H2 - H2_RAW)))
    b2p = jnp.pad(b2, (0, H2 - H2_RAW))
    w3p = jnp.pad(w3[:, 0], (0, H2 - H2_RAW))           # (128,), zero padded
    return (
        w1.astype(jnp.bfloat16),
        b1.reshape(1, H1).astype(jnp.float32),
        w2p.astype(jnp.bfloat16),
        b2p.reshape(1, H2).astype(jnp.float32),
        w3p.reshape(1, H2).astype(jnp.float32),          # layer-3 weight row stays f32
        b3.reshape(1, 1).astype(jnp.float32),
    )


def reference_forward_f32(x, params):
    """Pure-JAX f32 reference (matches the PyTorch module in eval mode)."""
    w1, b1, w2, b2, w3, b3 = params
    h1 = jnp.maximum(x.astype(jnp.float32) @ w1 + b1, 0.0)
    h2 = jnp.maximum(h1 @ w2 + b2, 0.0)
    return jax.nn.sigmoid(h2 @ w3 + b3)


def reference_forward_bf16(x, kernel_params):
    """Reference that mimics the kernel's bf16 quantization (tight check)."""
    w1, b1, w2, b2, w3, b3 = kernel_params
    xb = x.astype(jnp.bfloat16)
    h1 = jnp.maximum(jnp.dot(xb, w1, preferred_element_type=jnp.float32) + b1, 0.0)
    h2 = jnp.maximum(
        jnp.dot(h1.astype(jnp.bfloat16), w2, preferred_element_type=jnp.float32) + b2,
        0.0)
    logits = jnp.einsum("bk,ok->bo", h2, w3,
                        preferred_element_type=jnp.float32) + b3[0, 0]
    return jax.nn.sigmoid(logits)


if __name__ == "__main__":
    key = jax.random.PRNGKey(0)
    kx, kx2, kp = jax.random.split(key, 3)

    params_f32 = init_params(kp, input_dim=D_IN)
    kparams = prepare_params(params_f32)

    # Small single-tile batch, f32 input (bf16 cast happens inside the kernel).
    B = 16
    x = jax.random.normal(kx, (B, D_IN), dtype=jnp.float32)
    out = jax.block_until_ready(mlp_classifier_forward(x, kparams))
    assert out.shape == (B, 1), out.shape

    ref_bf = reference_forward_bf16(x, kparams)
    ref_32 = reference_forward_f32(x, params_f32)
    assert jnp.allclose(out, ref_bf, atol=1e-4, rtol=1e-4), "mismatch vs bf16 reference"
    assert jnp.allclose(out, ref_32, atol=2e-2, rtol=2e-2), "mismatch vs f32 reference"

    # Multi-tile + ragged batch (3 grid steps, last tile zero-padded), bf16 x
    # fast path (caller-provided bf16 halves the dominant HBM stream).
    B2 = 300
    x2 = jax.random.normal(kx2, (B2, D_IN), dtype=jnp.float32).astype(jnp.bfloat16)
    out2 = jax.block_until_ready(mlp_classifier_forward(x2, kparams, tile_b=128))
    assert out2.shape == (B2, 1), out2.shape
    ref2 = reference_forward_bf16(x2, kparams)
    assert jnp.allclose(out2, ref2, atol=1e-4, rtol=1e-4), "multi-tile mismatch"

    print("KERNEL_OK")
</pallas_src>

<mosaic_0001>
module attributes {stable_mosaic.version = 11 : i64} {
  func.func @mlp_kernel(%arg0: i32, %arg1: memref<128x768xf32, #tpu.memory_space<vmem>>, %arg2: memref<768x256xbf16, #tpu.memory_space<vmem>>, %arg3: memref<1x256xf32, #tpu.memory_space<vmem>>, %arg4: memref<256x128xbf16, #tpu.memory_space<vmem>>, %arg5: memref<1x128xf32, #tpu.memory_space<vmem>>, %arg6: memref<1x128xf32, #tpu.memory_space<vmem>>, %arg7: memref<1x1xf32, #tpu.memory_space<smem>>, %arg8: memref<1x1x128xf32, #tpu.memory_space<vmem>>) attributes {dimension_semantics = [#tpu.dimension_semantics<parallel>], iteration_bounds = array<i64: 1>, scalar_prefetch = 0 : i64, scratch_operands = 0 : i64, tpu.core_type = #tpu.core_type<tc>, window_params = [{transform_indices = @transform_0, window_bounds = array<i64: 128, 768>}, {pipeline_mode = #tpu.pipeline_mode<synchronous>, transform_indices = @transform_1, window_bounds = array<i64: 768, 256>}, {pipeline_mode = #tpu.pipeline_mode<synchronous>, transform_indices = @transform_2, window_bounds = array<i64: 1, 256>}, {pipeline_mode = #tpu.pipeline_mode<synchronous>, transform_indices = @transform_3, window_bounds = array<i64: 256, 128>}, {pipeline_mode = #tpu.pipeline_mode<synchronous>, transform_indices = @transform_4, window_bounds = array<i64: 1, 128>}, {pipeline_mode = #tpu.pipeline_mode<synchronous>, transform_indices = @transform_5, window_bounds = array<i64: 1, 128>}, {transform_indices = @transform_6, window_bounds = array<i64: 1, 1>}, {transform_indices = @transform_7, window_bounds = array<i64: 1, 1, 128>}]} {
    %c0 = arith.constant 0 : index
    %c0_0 = arith.constant 0 : index
    %0 = vector.load %arg1[%c0, %c0_0] : memref<128x768xf32, #tpu.memory_space<vmem>>, vector<128x768xf32>
    %1 = arith.truncf %0 : vector<128x768xf32> to vector<128x768xbf16>
    %c0_1 = arith.constant 0 : index
    %c0_2 = arith.constant 0 : index
    %2 = vector.load %arg2[%c0_1, %c0_2] : memref<768x256xbf16, #tpu.memory_space<vmem>>, vector<768x256xbf16>
    %cst = arith.constant dense<0.000000e+00> : vector<128x256xf32>
    %3 = tpu.matmul %1, %2, %cst {dimension_numbers = #tpu.dot_dimension_numbers<[1], [0], [0], [1], [0, 0, 1, 1], [], []>} : vector<128x768xbf16>, vector<768x256xbf16>, vector<128x256xf32> -> vector<128x256xf32>
    %c0_3 = arith.constant 0 : index
    %c0_4 = arith.constant 0 : index
    %4 = vector.load %arg3[%c0_3, %c0_4] : memref<1x256xf32, #tpu.memory_space<vmem>>, vector<1x256xf32>
    %5 = vector.broadcast %4 : vector<1x256xf32> to vector<128x256xf32>
    %6 = arith.addf %3, %5 : vector<128x256xf32>
    %cst_5 = arith.constant 0.000000e+00 : f32
    %7 = vector.broadcast %cst_5 : f32 to vector<128x256xf32>
    %8 = arith.maximumf %6, %7 : vector<128x256xf32>
    %9 = arith.truncf %8 : vector<128x256xf32> to vector<128x256xbf16>
    %c0_6 = arith.constant 0 : index
    %c0_7 = arith.constant 0 : index
    %10 = vector.load %arg4[%c0_6, %c0_7] : memref<256x128xbf16, #tpu.memory_space<vmem>>, vector<256x128xbf16>
    %cst_8 = arith.constant dense<0.000000e+00> : vector<128x128xf32>
    %11 = tpu.matmul %9, %10, %cst_8 {dimension_numbers = #tpu.dot_dimension_numbers<[1], [0], [0], [1], [0, 0, 1, 1], [], []>} : vector<128x256xbf16>, vector<256x128xbf16>, vector<128x128xf32> -> vector<128x128xf32>
    %c0_9 = arith.constant 0 : index
    %c0_10 = arith.constant 0 : index
    %12 = vector.load %arg5[%c0_9, %c0_10] : memref<1x128xf32, #tpu.memory_space<vmem>>, vector<1x128xf32>
    %13 = vector.broadcast %12 : vector<1x128xf32> to vector<128x128xf32>
    %14 = arith.addf %11, %13 : vector<128x128xf32>
    %cst_11 = arith.constant 0.000000e+00 : f32
    %15 = vector.broadcast %cst_11 : f32 to vector<128x128xf32>
    %16 = arith.maximumf %14, %15 : vector<128x128xf32>
    %c0_12 = arith.constant 0 : index
    %c0_13 = arith.constant 0 : index
    %17 = vector.load %arg6[%c0_12, %c0_13] : memref<1x128xf32, #tpu.memory_space<vmem>>, vector<1x128xf32>
    "tpu.trace_start"() <{level = 10 : i32, message = "ok,bk->ob"}> : () -> ()
    %cst_14 = arith.constant dense<0.000000e+00> : vector<1x128xf32>
    %18 = tpu.matmul %17, %16, %cst_14 {dimension_numbers = #tpu.dot_dimension_numbers<[1], [1], [0], [0], [0, 0, 1, 0], [], []>} : vector<1x128xf32>, vector<128x128xf32>, vector<1x128xf32> -> vector<1x128xf32>
    "tpu.trace_stop"() : () -> ()
    %c0_15 = arith.constant 0 : index
    %c0_16 = arith.constant 0 : index
    %19 = memref.load %arg7[%c0_15, %c0_16] : memref<1x1xf32, #tpu.memory_space<smem>>
    %20 = vector.broadcast %19 : f32 to vector<1x128xf32>
    %21 = arith.addf %18, %20 : vector<1x128xf32>
    %22 = arith.negf %21 : vector<1x128xf32>
    %23 = math.exp %22 : vector<1x128xf32>
    %cst_17 = arith.constant 1.000000e+00 : f32
    %24 = vector.broadcast %cst_17 : f32 to vector<1x128xf32>
    %25 = arith.addf %24, %23 : vector<1x128xf32>
    %26 = arith.divf %24, %25 : vector<1x128xf32>
    %27 = vector.shape_cast %26 : vector<1x128xf32> to vector<1x1x128xf32>
    %c0_18 = arith.constant 0 : index
    %c0_19 = arith.constant 0 : index
    %c0_20 = arith.constant 0 : index
    %28 = vector.load %arg8[%c0_18, %c0_19, %c0_20] : memref<1x1x128xf32, #tpu.memory_space<vmem>>, vector<1x1x128xf32>
    tpu.vector_store %arg8[%c0_18, %c0_19, %c0_20], %27 {strides = array<i32>} : memref<1x1x128xf32, #tpu.memory_space<vmem>>, vector<1x1x128xf32>,
    return
  }
  func.func @transform_0(%arg0: i32) -> (i32, i32) {
    %c0_i32 = arith.constant 0 : i32
    %c0_i32_0 = arith.constant 0 : i32
    return %arg0, %c0_i32 : i32, i32
  }
  func.func @transform_1(%arg0: i32) -> (i32, i32) {
    %c0_i32 = arith.constant 0 : i32
    %c0_i32_0 = arith.constant 0 : i32
    %c0_i32_1 = arith.constant 0 : i32
    return %c0_i32, %c0_i32_0 : i32, i32
  }
  func.func @transform_2(%arg0: i32) -> (i32, i32) {
    %c0_i32 = arith.constant 0 : i32
    %c0_i32_0 = arith.constant 0 : i32
    %c0_i32_1 = arith.constant 0 : i32
    return %c0_i32, %c0_i32_0 : i32, i32
  }
  func.func @transform_3(%arg0: i32) -> (i32, i32) {
    %c0_i32 = arith.constant 0 : i32
    %c0_i32_0 = arith.constant 0 : i32
    %c0_i32_1 = arith.constant 0 : i32
    return %c0_i32, %c0_i32_0 : i32, i32
  }
  func.func @transform_4(%arg0: i32) -> (i32, i32) {
    %c0_i32 = arith.constant 0 : i32
    %c0_i32_0 = arith.constant 0 : i32
    %c0_i32_1 = arith.constant 0 : i32
    return %c0_i32, %c0_i32_0 : i32, i32
  }
  func.func @transform_5(%arg0: i32) -> (i32, i32) {
    %c0_i32 = arith.constant 0 : i32
    %c0_i32_0 = arith.constant 0 : i32
    %c0_i32_1 = arith.constant 0 : i32
    return %c0_i32, %c0_i32_0 : i32, i32
  }
  func.func @transform_6(%arg0: i32) -> (i32, i32) {
    %c0_i32 = arith.constant 0 : i32
    %c0_i32_0 = arith.constant 0 : i32
    %c0_i32_1 = arith.constant 0 : i32
    return %c0_i32, %c0_i32_0 : i32, i32
  }
  func.func @transform_7(%arg0: i32) -> (i32, i32, i32) {
    %c0_i32 = arith.constant 0 : i32
    %c0_i32_0 = arith.constant 0 : i32
    %c0_i32_1 = arith.constant 0 : i32
    return %arg0, %c0_i32, %c0_i32_0 : i32, i32, i32
  }
}

</mosaic_0001>

<bundles_post_ra>
// kernel: mlp_classifier_forward.1
= control target key start
LH: loop header
LB: loop body
LE: loop exit
PB: predicated region body
PF: predicated region fallthrough
CT: control target
= control target key end

     0   :  { %13 = vsyncpa [#allocation4], 0  ;;  %s1915_s24 = smov [#allocation3]   ;;  %s2790_s0 = inlined_call_operand.vmem [shape: f32[128,768], index: 0, kind: input, shape index: {}]   ;;  %s2791_s1 = inlined_call_operand.vmem [shape: bf16[768,256], index: 1, kind: input, shape index: {}]   ;;  %s2792_s2 = inlined_call_operand.vmem [shape: f32[1,256], index: 2, kind: input, shape index: {}]   ;;  %s2793_s3 = inlined_call_operand.hbm [shape: bf16[256,128], index: 3, kind: input, shape index: {}]   ;;  %s2794_s4 = inlined_call_operand.vmem [shape: f32[1,128], index: 4, kind: input, shape index: {}]   ;;  %s2795_s5 = inlined_call_operand.vmem [shape: f32[1,128], index: 5, kind: input, shape index: {}]   ;;  %s2796_s6 = inlined_call_operand.<no memory space> [shape: f32[1,1], index: 6, kind: input, shape index: {}]   ;;  %s2797_s7 = inlined_call_operand.vmem [shape: f32[1,1,128], index: 7, kind: output, shape index: {}]  }
   0x1   :  { %s25_s25 = sshll.u32 %s1915_s24, 4  ;;  %s26_s25 = int_to_ptr.vmem [resolvable:$true] %s25_s25 }
   0x2   :  { %s1901_s26 = scalar_lea.vmem %s26_s25, 2048  ;;  %p1906_p1 = scmp.lt.s32.totalorder %s26_s25, %s26_s25 }
   0x3   :  { %p1902_p0 = scmp.ne.s32.totalorder %s26_s25, %s1901_s26  ;;  %p1907_p2 = scmp.lt.s32.totalorder %s1901_s26, %s1901_s26 }
   0x5   :  { %p1908_p3 = por %p1907_p2, %p1906_p1 }
   0x7   :  { %p1909_p4 = pnand %p1908_p3, %p1902_p0 }
   0x9   :  { %1912 = shalt.err (!%p1909_p4)
}
   0xa   :  { %s1916_s27 = smov 64   ;;  %s1917_s28 = smov 4  }
   0xb   :  { %31 = dma.hbm_to_vmem [thread:$0]  %s2793_s3, 2048, %s26_s25, [#allocation4], %s1916_s27, %s1916_s27, %s1917_s28  }
   0xc   :  { %1913 = dma.done.wait [#allocation4], 2048  }
   0xd   :  { %1914 = vsyncadd [#allocation4], 4294965248  ;;  %v1729_v0 = vld [vmem:[%s2791_s1 + $0x74] ss:$8 sps:$4 sm:$0xff]   ;;  %v1731_v1 = vld [vmem:[%s2791_s1 + $0x70] ss:$8 sps:$4 sm:$0xff]  }
   0xe   :  { %774 = vmatprep.subr.bf16.mxu0 %v1729_v0  ;;  %v1732_v2 = vld [vmem:[%s2791_s1 + $0x174] ss:$8 sps:$4 sm:$0xff]   ;;  %v1734_v3 = vld [vmem:[%s2791_s1 + $0x170] ss:$8 sps:$4 sm:$0xff]   ;;  %v1735_v4 = vld [vmem:[%s2791_s1 + $0x64] ss:$8 sps:$4 sm:$0xff]  }
   0xf   :  { %775 = vmatpush1.bf16.msra.mxu0 %v1731_v1  ;;  %v1737_v5 = vld [vmem:[%s2791_s1 + $0x60] ss:$8 sps:$4 sm:$0xff]   ;;  %887 = vmatprep.subr.bf16.mxu1 %v1732_v2  ;;  %v1738_v6 = vld [vmem:[%s2791_s1 + $0x164] ss:$8 sps:$4 sm:$0xff]   ;;  %v1741_v8 = vld [vmem:[%s2791_s1 + $0x54] ss:$8 sps:$4 sm:$0xff]  }
  0x10   :  { %888 = vmatpush1.bf16.msra.mxu1 %v1734_v3  ;;  %776 = vmatprep.subr.bf16.mxu0 %v1735_v4  ;;  %v1740_v7 = vld [vmem:[%s2791_s1 + $0x160] ss:$8 sps:$4 sm:$0xff]   ;;  %v1743_v9 = vld [vmem:[%s2791_s1 + $0x50] ss:$8 sps:$4 sm:$0xff]   ;;  %v1744_v10 = vld [vmem:[%s2791_s1 + $0x154] ss:$8 sps:$4 sm:$0xff]  }
  0x11   :  { %889 = vmatprep.subr.bf16.mxu1 %v1738_v6  ;;  %v1747_v11 = vld [vmem:[%s2791_s1 + $0x44] ss:$8 sps:$4 sm:$0xff]   ;;  %v1746_v12 = vld [vmem:[%s2791_s1 + $0x150] ss:$8 sps:$4 sm:$0xff]   ;;  %v1749_v14 = vld [vmem:[%s2791_s1 + $0x40] ss:$8 sps:$4 sm:$0xff]  }
  0x12   :  { %v1750_v13 = vld [vmem:[%s2791_s1 + $0x144] ss:$8 sps:$4 sm:$0xff]   ;;  %v1753_v15 = vld [vmem:[%s2791_s1 + $0x34] ss:$8 sps:$4 sm:$0xff]   ;;  %v1752_v16 = vld [vmem:[%s2791_s1 + $0x140] ss:$8 sps:$4 sm:$0xff]  }
  0x13   :  { %777 = vmatpush1.bf16.msra.mxu0 %v1737_v5  ;;  %v1756_v17 = vld [vmem:[%s2791_s1 + $0x134] ss:$8 sps:$4 sm:$0xff]   ;;  %v1755_v18 = vld [vmem:[%s2791_s1 + $0x30] ss:$8 sps:$4 sm:$0xff]   ;;  %v1759_v19 = vld [vmem:[%s2791_s1 + $0x24] ss:$8 sps:$4 sm:$0xff]  }
  0x14   :  { %778 = vmatprep.subr.bf16.mxu0 %v1741_v8  ;;  %890 = vmatpush1.bf16.msra.mxu1 %v1740_v7  ;;  %v1758_v20 = vld [vmem:[%s2791_s1 + $0x130] ss:$8 sps:$4 sm:$0xff]   ;;  %v1762_v21 = vld [vmem:[%s2791_s1 + $0x124] ss:$8 sps:$4 sm:$0xff]   ;;  %v1761_v22 = vld [vmem:[%s2791_s1 + $0x20] ss:$8 sps:$4 sm:$0xff]  }
  0x15   :  { %891 = vmatprep.subr.bf16.mxu1 %v1744_v10  ;;  %v1765_v23 = vld [vmem:[%s2791_s1 + $0x14] ss:$8 sps:$4 sm:$0xff]   ;;  %v1764_v24 = vld [vmem:[%s2791_s1 + $0x120] ss:$8 sps:$4 sm:$0xff]   ;;  %v1767_v26 = vld [vmem:[%s2791_s1 + $0x10] ss:$8 sps:$4 sm:$0xff]  }
  0x16   :  { %v1768_v25 = vld [vmem:[%s2791_s1 + $0x114] ss:$8 sps:$4 sm:$0xff]   ;;  %v1771_v27 = vld [vmem:[%s2791_s1 + $0x4] ss:$8 sps:$4 sm:$0xff]   ;;  %v1770_v28 = vld [vmem:[%s2791_s1 + $0x110] ss:$8 sps:$4 sm:$0xff]  }
  0x17   :  { %779 = vmatpush1.bf16.msra.mxu0 %v1743_v9  ;;  %v1774_v29 = vld [vmem:[%s2791_s1 + $0x104] ss:$8 sps:$4 sm:$0xff]   ;;  %v1773_v30 = vld [vmem:[%s2791_s1] ss:$8 sps:$4 sm:$0xff]   ;;  %v1777_v31 = vld [vmem:[%s2791_s1 + $0xf4] ss:$8 sps:$4 sm:$0xff]  }
  0x18   :  { %780 = vmatprep.subr.bf16.mxu0 %v1747_v11  ;;  %892 = vmatpush1.bf16.msra.mxu1 %v1746_v12  ;;  %v1776_v32 = vld [vmem:[%s2791_s1 + $0x100] ss:$8 sps:$4 sm:$0xff]   ;;  %v1780_v33 = vld [vmem:[%s2791_s1 + $0x1f4] ss:$8 sps:$4 sm:$0xff]   ;;  %v1779_v34 = vld [vmem:[%s2791_s1 + $0xf0] ss:$8 sps:$4 sm:$0xff]  }
  0x19   :  { %893 = vmatprep.subr.bf16.mxu1 %v1750_v13  ;;  %v1783_v35 = vld [vmem:[%s2791_s1 + $0xe4] ss:$8 sps:$4 sm:$0xff]   ;;  %v1782_v36 = vld [vmem:[%s2791_s1 + $0x1f0] ss:$8 sps:$4 sm:$0xff]   ;;  %v1785_v38 = vld [vmem:[%s2791_s1 + $0xe0] ss:$8 sps:$4 sm:$0xff]  }
  0x1a   :  { %v1786_v37 = vld [vmem:[%s2791_s1 + $0x1e4] ss:$8 sps:$4 sm:$0xff]   ;;  %v1789_v39 = vld [vmem:[%s2791_s1 + $0xd4] ss:$8 sps:$4 sm:$0xff]   ;;  %v1788_v40 = vld [vmem:[%s2791_s1 + $0x1e0] ss:$8 sps:$4 sm:$0xff]  }
  0x1b   :  { %781 = vmatpush1.bf16.msra.mxu0 %v1749_v14  ;;  %v1792_v41 = vld [vmem:[%s2791_s1 + $0x1d4] ss:$8 sps:$4 sm:$0xff]   ;;  %v1791_v42 = vld [vmem:[%s2791_s1 + $0xd0] ss:$8 sps:$4 sm:$0xff]   ;;  %v1795_v43 = vld [vmem:[%s2791_s1 + $0xc4] ss:$8 sps:$4 sm:$0xff]  }
  0x1c   :  { %782 = vmatprep.subr.bf16.mxu0 %v1753_v15  ;;  %894 = vmatpush1.bf16.msra.mxu1 %v1752_v16  ;;  %v1794_v44 = vld [vmem:[%s2791_s1 + $0x1d0] ss:$8 sps:$4 sm:$0xff]   ;;  %v1798_v45 = vld [vmem:[%s2791_s1 + $0x1c4] ss:$8 sps:$4 sm:$0xff]   ;;  %v1797_v48 = vld [vmem:[%s2791_s1 + $0xc0] ss:$8 sps:$4 sm:$0xff]  }
  0x1d   :  { %895 = vmatprep.subr.bf16.mxu1 %v1756_v17  ;;  %v43_v46 = vld [vmem:[%s2790_s0 + $0x8] sm:$0xff]  ;;  %v49_v47 = vld [vmem:[%s2790_s0 + $0x38] sm:$0xff]  ;;  %v42_v5 = vld [vmem:[%s2790_s0] sm:$0xff]  ;;  %vm1919_vm0 = vmmov 0  }
  0x1e   :  { %v139_v49 = vpack.c.bf16 %v49_v47, %v43_v46  ;;  %v1801_v50 = vld [vmem:[%s2791_s1 + $0xb4] ss:$8 sps:$4 sm:$0xff]   ;;  %v1800_v51 = vld [vmem:[%s2791_s1 + $0x1c0] ss:$8 sps:$4 sm:$0xff]   ;;  %v1803_v56 = vld [vmem:[%s2791_s1 + $0xb0] ss:$8 sps:$4 sm:$0xff]  }
  0x1f   :  { %783 = vmatpush1.bf16.msra.mxu0 %v1755_v18  ;;  %v45_v52 = vld [vmem:[%s2790_s0 + $0x18] sm:$0xff]  ;;  %v51_v53 = vld [vmem:[%s2790_s0 + $0x48] sm:$0xff]  ;;  %v48_v6 = vld [vmem:[%s2790_s0 + $0x30] sm:$0xff] }
  0x20   :  { %784 = vmatprep.subr.bf16.mxu0 %v1759_v19  ;;  %896 = vmatpush1.bf16.msra.mxu1 %v1758_v20  ;;  %v1804_v54 = vld [vmem:[%s2791_s1 + $0x1b4] ss:$8 sps:$4 sm:$0xff]   ;;  %v141_v55 = vpack.c.bf16 %v51_v53, %v45_v52  ;;  %v1807_v57 = vld [vmem:[%s2791_s1 + $0xa4] ss:$8 sps:$4 sm:$0xff]   ;;  %v1806_v58 = vld [vmem:[%s2791_s1 + $0x1b0] ss:$8 sps:$4 sm:$0xff]   ;;  %v138_v13 = vpack.c.bf16 %v48_v6, %v42_v5 }
  0x21   :  { %897 = vmatprep.subr.bf16.mxu1 %v1762_v21  ;;  %806 = vmatprep.mubr.bf16.mxu0 %v139_v49  ;;  %v1810_v59 = vld [vmem:[%s2791_s1 + $0x1a4] ss:$8 sps:$4 sm:$0xff]   ;;  %v1809_v60 = vld [vmem:[%s2791_s1 + $0xa0] ss:$8 sps:$4 sm:$0xff]   ;;  %v1813_v61 = vld [vmem:[%s2791_s1 + $0x94] ss:$8 sps:$4 sm:$0xff]  }
  0x22   :  { %919 = vmatprep.mubr.bf16.mxu1 %v141_v55  ;;  %v1812_v62 = vld [vmem:[%s2791_s1 + $0x1a0] ss:$8 sps:$4 sm:$0xff]   ;;  %v1816_v63 = vld [vmem:[%s2791_s1 + $0x194] ss:$8 sps:$4 sm:$0xff]   ;;  %v1815_v0 = vld [vmem:[%s2791_s1 + $0x90] ss:$8 sps:$4 sm:$0xff]  }
  0x23   :  { %785 = vmatpush1.bf16.msra.mxu0 %v1761_v22  ;;  %v1819_v1 = vld [vmem:[%s2791_s1 + $0x84] ss:$8 sps:$4 sm:$0xff]   ;;  %v1818_v2 = vld [vmem:[%s2791_s1 + $0x190] ss:$8 sps:$4 sm:$0xff]   ;;  %v1821_v3 = vld [vmem:[%s2791_s1 + $0x80] ss:$8 sps:$4 sm:$0xff]  }
  0x24   :  { %786 = vmatprep.subr.bf16.mxu0 %v1765_v23  ;;  %898 = vmatpush1.bf16.msra.mxu1 %v1764_v24  ;;  %v1822_v4 = vld [vmem:[%s2791_s1 + $0x184] ss:$8 sps:$4 sm:$0xff]   ;;  %v1827_v7 = vld [vmem:[%s2791_s1 + $0x274] ss:$8 sps:$4 sm:$0xff]   ;;  %v1824_v10 = vld [vmem:[%s2791_s1 + $0x180] ss:$8 sps:$4 sm:$0xff]  }
  0x25   :  { %899 = vmatprep.subr.bf16.mxu1 %v1768_v25  ;;  %v55_v8 = vld [vmem:[%s2790_s0 + $0x68] sm:$0xff]  ;;  %v61_v9 = vld [vmem:[%s2790_s0 + $0x98] sm:$0xff]  ;;  %v44_v11 = vld [vmem:[%s2790_s0 + $0x10] sm:$0xff] }
  0x26   :  { %v50_v12 = vld [vmem:[%s2790_s0 + $0x40] sm:$0xff]  ;;  %v57_v14 = vld [vmem:[%s2790_s0 + $0x78] sm:$0xff]  ;;  %v63_v15 = vld [vmem:[%s2790_s0 + $0xa8] sm:$0xff]  ;;  %v145_v17 = vpack.c.bf16 %v61_v9, %v55_v8 }
  0x27   :  { %787 = vmatpush1.bf16.msra.mxu0 %v1767_v26  ;;  %v1825_v16 = vld [vmem:[%s2791_s1 + $0x270] ss:$8 sps:$4 sm:$0xff]   ;;  %v140_v18 = vpack.c.bf16 %v50_v12, %v44_v11  ;;  %v1830_v19 = vld [vmem:[%s2791_s1 + $0x264] ss:$8 sps:$4 sm:$0xff]   ;;  %v147_v20 = vpack.c.bf16 %v63_v15, %v57_v14  ;;  %v1828_v21 = vld [vmem:[%s2791_s1 + $0x260] ss:$8 sps:$4 sm:$0xff]  }
  0x28   :  { %788 = vmatprep.subr.bf16.mxu0 %v1771_v27  ;;  %900 = vmatpush1.bf16.msra.mxu1 %v1770_v28  ;;  %v54_v22 = vld [vmem:[%s2790_s0 + $0x60] sm:$0xff]  ;;  %v60_v23 = vld [vmem:[%s2790_s0 + $0x90] sm:$0xff]  ;;  %v67_v25 = vld [vmem:[%s2790_s0 + $0xc8] sm:$0xff] }
  0x29   :  { %901 = vmatprep.subr.bf16.mxu1 %v1774_v29  ;;  %v1833_v24 = vld [vmem:[%s2791_s1 + $0x254] ss:$8 sps:$4 sm:$0xff]   ;;  %v62_v28 = vld [vmem:[%s2790_s0 + $0xa0] sm:$0xff]  ;;  %v144_v29 = vpack.c.bf16 %v60_v23, %v54_v22  ;;  %v87_v47 = vld [vmem:[%s2790_s0 + $0x168] sm:$0xff] }
  0x2a   :  { %v73_v26 = vld [vmem:[%s2790_s0 + $0xf8] sm:$0xff]  ;;  %v56_v27 = vld [vmem:[%s2790_s0 + $0x70] sm:$0xff]  ;;  %v1840_v53 = vld [vmem:[%s2791_s1 + $0x220] ss:$8 sps:$4 sm:$0xff]  }
  0x2b   :  { %789 = vmatpush1.bf16.msra.mxu0 %v1773_v30  ;;  %v69_v30 = vld [vmem:[%s2790_s0 + $0xd8] sm:$0xff]  ;;  %v84_v55 = vld [vmem:[%s2790_s0 + $0x150] sm:$0xff]  ;;  %v1846_v5 = vld [vmem:[%s2791_s1 + $0x200] ss:$8 sps:$4 sm:$0xff]  }
  0x2c   :  { %790 = vmatprep.subr.bf16.mxu0 %v1777_v31  ;;  %902 = vmatpush1.bf16.msra.mxu1 %v1776_v32  ;;  %v75_v31 = vld [vmem:[%s2790_s0 + $0x108] sm:$0xff]  ;;  %v1831_v32 = vld [vmem:[%s2791_s1 + $0x250] ss:$8 sps:$4 sm:$0xff]   ;;  %v90_v6 = vld [vmem:[%s2790_s0 + $0x180] sm:$0xff] }
  0x2d   :  { %903 = vmatprep.subr.bf16.mxu1 %v1780_v33  ;;  %v151_v33 = vpack.c.bf16 %v73_v26, %v67_v25  ;;  %v81_v46 = vld [vmem:[%s2790_s0 + $0x138] sm:$0xff]  ;;  %v103_v9 = vld [vmem:[%s2790_s0 + $0x1e8] sm:$0xff]  ;;  %v92_v11 = vld [vmem:[%s2790_s0 + $0x190] sm:$0xff] }
  0x2e   :  { %v159_v52 = vpack.c.bf16 %v87_v47, %v81_v46  ;;  %v1851_v8 = vld [vmem:[%s2791_s1 + $0x2f4] ss:$8 sps:$4 sm:$0xff]   ;;  %v98_v12 = vld [vmem:[%s2790_s0 + $0x1c0] sm:$0xff]  ;;  %v111_v15 = vld [vmem:[%s2790_s0 + $0x228] sm:$0xff] }
  0x2f   :  { %791 = vmatpush2.bf16.msra.mxu0 %v1779_v34  ;;  %v146_v34 = vpack.c.bf16 %v62_v28, %v56_v27  ;;  %v105_v14 = vld [vmem:[%s2790_s0 + $0x1f8] sm:$0xff]  ;;  %v108_v22 = vld [vmem:[%s2790_s0 + $0x210] sm:$0xff]  ;;  %v115_v25 = vld [vmem:[%s2790_s0 + $0x248] sm:$0xff] }
  0x30   :  { %792 = vmatprep.subr.bf16.mxu0 %v1783_v35  ;;  %904 = vmatpush2.bf16.msra.mxu1 %v1782_v36  ;;  %v1836_v35 = vld [vmem:[%s2791_s1 + $0x244] ss:$8 sps:$4 sm:$0xff]   ;;  %v153_v36 = vpack.c.bf16 %v75_v31, %v69_v30  ;;  %v171_v23 = vpack.c.bf16 %v111_v15, %v105_v14  ;;  %v121_v26 = vld [vmem:[%s2790_s0 + $0x278] sm:$0xff]  ;;  %v104_v27 = vld [vmem:[%s2790_s0 + $0x1f0] sm:$0xff] }
  0x31   :  { %905 = vmatprep.subr.bf16.mxu1 %v1786_v37  ;;  %v1834_v37 = vld [vmem:[%s2791_s1 + $0x240] ss:$8 sps:$4 sm:$0xff]   ;;  %v1855_v31 = vld [vmem:[%s2791_s1 + $0x2d0] ss:$8 sps:$4 sm:$0xff]  }
  0x32   :  { %v110_v28 = vld [vmem:[%s2790_s0 + $0x220] sm:$0xff]  ;;  %v123_v30 = vld [vmem:[%s2790_s0 + $0x288] sm:$0xff]  ;;  %v129_v46 = vld [vmem:[%s2790_s0 + $0x2b8] sm:$0xff] }
  0x33   :  { %793 = vmatpush2.bf16.msra.mxu0 %v1785_v38  ;;  %v66_v38 = vld [vmem:[%s2790_s0 + $0xc0] sm:$0xff]  ;;  %v135_v47 = vld [vmem:[%s2790_s0 + $0x2e8] sm:$0xff] }
  0x34   :  { %794 = vmatprep.subr.bf16.mxu0 %v1789_v39  ;;  %906 = vmatpush2.bf16.msra.mxu1 %v1788_v40  ;;  %v72_v39 = vld [vmem:[%s2790_s0 + $0xf0] sm:$0xff]  ;;  %v70_v15 = vld [vmem:[%s2790_s0 + $0xe0] sm:$0xff] }
  0x35   :  { %907 = vmatprep.subr.bf16.mxu1 %v1792_v41  ;;  %v1839_v40 = vld [vmem:[%s2791_s1 + $0x234] ss:$8 sps:$4 sm:$0xff]   ;;  %v79_v41 = vld [vmem:[%s2790_s0 + $0x128] sm:$0xff] }
  0x37   :  { %795 = vmatpush2.bf16.msra.mxu0 %v1791_v42  ;;  %v85_v42 = vld [vmem:[%s2790_s0 + $0x158] sm:$0xff] }
  0x38   :  { %796 = vmatprep.subr.bf16.mxu0 %v1795_v43  ;;  %908 = vmatpush2.bf16.msra.mxu1 %v1794_v44  ;;  %v68_v43 = vld [vmem:[%s2790_s0 + $0xd0] sm:$0xff]  ;;  %v74_v44 = vld [vmem:[%s2790_s0 + $0x100] sm:$0xff]  ;;  %v157_v49 = vpack.c.bf16 %v85_v42, %v79_v41  ;;  %v127_v41 = vld [vmem:[%s2790_s0 + $0x2a8] sm:$0xff] }
  0x39   :  { %909 = vmatprep.subr.bf16.mxu1 %v1798_v45  ;;  %v150_v45 = vpack.c.bf16 %v72_v39, %v66_v38  ;;  %v114_v38 = vld [vmem:[%s2790_s0 + $0x240] sm:$0xff]  ;;  %v120_v39 = vld [vmem:[%s2790_s0 + $0x270] sm:$0xff]  ;;  %v133_v42 = vld [vmem:[%s2790_s0 + $0x2d8] sm:$0xff] }
  0x3b   :  { %797 = vmatpush2.bf16.msra.mxu0 %v1797_v48  ;;  %v1837_v48 = vld [vmem:[%s2791_s1 + $0x230] ss:$8 sps:$4 sm:$0xff]  }
  0x3c   :  { %798 = vmatprep.subr.bf16.mxu0 %v1801_v50  ;;  %910 = vmatpush2.bf16.msra.mxu1 %v1800_v51  ;;  %v152_v50 = vpack.c.bf16 %v74_v44, %v68_v43  ;;  %v1842_v51 = vld [vmem:[%s2791_s1 + $0x224] ss:$8 sps:$4 sm:$0xff]   ;;  %v116_v43 = vld [vmem:[%s2790_s0 + $0x250] sm:$0xff] }
  0x3d   :  { %911 = vmatprep.subr.bf16.mxu1 %v1804_v54  ;;  %v78_v54 = vld [vmem:[%s2790_s0 + $0x120] sm:$0xff] }
  0x3e   :  { %v122_v44 = vld [vmem:[%s2790_s0 + $0x280] sm:$0xff] }
  0x3f   :  { %799 = vmatpush2.bf16.msra.mxu0 %v1803_v56  ;;  %v1845_v56 = vld [vmem:[%s2791_s1 + $0x214] ss:$8 sps:$4 sm:$0xff]  }
  0x40   :  { %800 = vmatprep.subr.bf16.mxu0 %v1807_v57  ;;  %912 = vmatpush2.bf16.msra.mxu1 %v1806_v58  ;;  %v91_v57 = vld [vmem:[%s2790_s0 + $0x188] sm:$0xff]  ;;  %v97_v58 = vld [vmem:[%s2790_s0 + $0x1b8] sm:$0xff] }
  0x41   :  { %913 = vmatprep.subr.bf16.mxu1 %v1810_v59  ;;  %v80_v59 = vld [vmem:[%s2790_s0 + $0x130] sm:$0xff] }
  0x43   :  { %801 = vmatpush2.bf16.msra.mxu0 %v1809_v60  ;;  %v86_v60 = vld [vmem:[%s2790_s0 + $0x160] sm:$0xff] }
  0x44   :  { %802 = vmatprep.subr.bf16.mxu0 %v1813_v61  ;;  %914 = vmatpush2.bf16.msra.mxu1 %v1812_v62  ;;  %v156_v61 = vpack.c.bf16 %v84_v55, %v78_v54  ;;  %v93_v62 = vld [vmem:[%s2790_s0 + $0x198] sm:$0xff]  ;;  %v126_v54 = vld [vmem:[%s2790_s0 + $0x2a0] sm:$0xff]  ;;  %v132_v55 = vld [vmem:[%s2790_s0 + $0x2d0] sm:$0xff] }
  0x45   :  { %915 = vmatprep.subr.bf16.mxu1 %v1816_v63  ;;  %v99_v63 = vld [vmem:[%s2790_s0 + $0x1c8] sm:$0xff] }
  0x47   :  { %803 = vmatpush2.bf16.msra.mxu0 %v1815_v0  ;;  %v1843_v0 = vld [vmem:[%s2791_s1 + $0x210] ss:$8 sps:$4 sm:$0xff]  }
  0x48   :  { %804 = vmatprep.subr.bf16.mxu0 %v1819_v1  ;;  %916 = vmatpush2.bf16.msra.mxu1 %v1818_v2  ;;  %v163_v1 = vpack.c.bf16 %v97_v58, %v91_v57  ;;  %v158_v2 = vpack.c.bf16 %v86_v60, %v80_v59  ;;  %v47_v57 = vld [vmem:[%s2790_s0 + $0x28] sm:$0xff]  ;;  %v53_v58 = vld [vmem:[%s2790_s0 + $0x58] sm:$0xff]  ;;  %v128_v59 = vld [vmem:[%s2790_s0 + $0x2b0] sm:$0xff] }
  0x49   :  { %917 = vmatprep.subr.bf16.mxu1 %v1822_v4  ;;  %v165_v4 = vpack.c.bf16 %v99_v63, %v93_v62  ;;  %v134_v60 = vld [vmem:[%s2790_s0 + $0x2e0] sm:$0xff]  ;;  %v1867_v62 = vld [vmem:[%s2791_s1 + $0x290] ss:$8 sps:$4 sm:$0xff]   ;;  %v143_v63 = vpack.c.bf16 %v53_v58, %v47_v57 }
  0x4a   :  { %v1883_v58 = vld [vmem:[#allocation3 + $0x50] sm:$0xff]  }
  0x4b   :  { %805 = vmatpush2.bf16.msra.mxu0 %v1821_v3  ;;  %v1848_v3 = vld [vmem:[%s2791_s1 + $0x204] ss:$8 sps:$4 sm:$0xff]  }
  0x4c   :  { %1000 = vmatprep.subr.bf16.mxu0 %v1827_v7  ;;  %918 = vmatpush2.bf16.msra.mxu1 %v1824_v10  ;;  %v96_v7 = vld [vmem:[%s2790_s0 + $0x1b0] sm:$0xff]  ;;  %v109_v10 = vld [vmem:[%s2790_s0 + $0x218] sm:$0xff] }
  0x4e   :  { %807 = vmatmul.mubr.bf16.vlgmr.msra.gmra.mxu0 %v138_v13  ;;  %v162_v13 = vpack.c.bf16 %v96_v7, %v90_v6  ;;  %v65_v6 = vld [vmem:[%s2790_s0 + $0xb8] sm:$0xff] }
  0x4f   :  { %1001 = vmatpush1.bf16.msra.mxu0 %v1825_v16  ;;  %816 = vmatprep.mubr.bf16.mxu0 %v145_v17  ;;  %v1849_v16 = vld [vmem:[%s2791_s1 + $0x2f0] ss:$8 sps:$4 sm:$0xff]   ;;  %v169_v17 = vpack.c.bf16 %v109_v10, %v103_v9  ;;  %v58_v9 = vld [vmem:[%s2790_s0 + $0x80] sm:$0xff] }
  0x50   :  { %920 = vmatmul.mubr.bf16.vlgmr.msra.gmra.mxu1 %v140_v18  ;;  %1002 = vmatprep.subr.bf16.mxu0 %v1830_v19  ;;  %v164_v18 = vpack.c.bf16 %v98_v12, %v92_v11  ;;  %v1854_v19 = vld [vmem:[%s2791_s1 + $0x2e4] ss:$8 sps:$4 sm:$0xff]   ;;  %v64_v10 = vld [vmem:[%s2790_s0 + $0xb0] sm:$0xff]  ;;  %v77_v12 = vld [vmem:[%s2790_s0 + $0x118] sm:$0xff] }
  0x51   :  { %929 = vmatprep.mubr.bf16.mxu1 %v147_v20  ;;  %v1852_v20 = vld [vmem:[%s2791_s1 + $0x2e0] ss:$8 sps:$4 sm:$0xff]  }
  0x52   :  { %v71_v11 = vld [vmem:[%s2790_s0 + $0xe8] sm:$0xff] }
  0x53   :  { %1003 = vmatpush1.bf16.msra.mxu0 %v1828_v21  ;;  %v102_v21 = vld [vmem:[%s2790_s0 + $0x1e0] sm:$0xff]  ;;  %v155_v14 = vpack.c.bf16 %v77_v12, %v71_v11 }
  0x54   :  { %1004 = vmatprep.subr.bf16.mxu0 %v1833_v24  ;;  %v1857_v24 = vld [vmem:[%s2791_s1 + $0x2d4] ss:$8 sps:$4 sm:$0xff]  }
  0x56   :  { %817 = vmatmul.mubr.bf16.gmra.mxu0 %v144_v29  ;;  %v117_v29 = vld [vmem:[%s2790_s0 + $0x258] sm:$0xff] }
  0x57   :  { %1005 = vmatpush1.bf16.msra.mxu0 %v1831_v32  ;;  %826 = vmatprep.mubr.bf16.mxu0 %v151_v33  ;;  %v168_v32 = vpack.c.bf16 %v108_v22, %v102_v21  ;;  %v1860_v33 = vld [vmem:[%s2791_s1 + $0x2c4] ss:$8 sps:$4 sm:$0xff]   ;;  %v1873_v21 = vld [vmem:[#allocation3 + $0x78] sm:$0xff]  }
  0x58   :  { %930 = vmatmul.mubr.bf16.gmra.mxu1 %v146_v34  ;;  %1006 = vmatprep.subr.bf16.mxu0 %v1836_v35  ;;  %v175_v34 = vpack.c.bf16 %v121_v26, %v115_v25  ;;  %v170_v35 = vpack.c.bf16 %v110_v28, %v104_v27  ;;  %v1874_v22 = vld [vmem:[#allocation3 + $0x38] sm:$0xff]   ;;  %v95_v25 = vld [vmem:[%s2790_s0 + $0x1a8] sm:$0xff] }
  0x59   :  { %939 = vmatprep.mubr.bf16.mxu1 %v153_v36  ;;  %v177_v36 = vpack.c.bf16 %v123_v30, %v117_v29  ;;  %1608 = vmatprep.subr.bf16.mxu1 %v1873_v21  ;;  %v101_v26 = vld [vmem:[%s2790_s0 + $0x1d8] sm:$0xff]  ;;  %v1875_v29 = vld [vmem:[#allocation3 + $0x70] sm:$0xff]  }
  0x5a   :  { %1609 = vmatpush3.bf16.msra.mxu1 %v1874_v22  ;;  %v167_v28 = vpack.c.bf16 %v101_v26, %v95_v25  ;;  %v1876_v30 = vld [vmem:[#allocation3 + $0x30] sm:$0xff]  }
  0x5b   :  { %1007 = vmatpush1.bf16.msra.mxu0 %v1834_v37  ;;  %v1858_v37 = vld [vmem:[%s2791_s1 + $0x2c0] ss:$8 sps:$4 sm:$0xff]   ;;  %1610 = vmatprep.subr.bf16.mxu1 %v1875_v29 }
  0x5c   :  { %1008 = vmatprep.subr.bf16.mxu0 %v1839_v40  ;;  %v1863_v40 = vld [vmem:[%s2791_s1 + $0x2b4] ss:$8 sps:$4 sm:$0xff]  }
  0x5e   :  { %827 = vmatmul.mubr.bf16.gmra.mxu0 %v150_v45  ;;  %v174_v45 = vpack.c.bf16 %v120_v39, %v114_v38  ;;  %1611 = vmatpush3.bf16.msra.mxu1 %v1876_v30  ;;  %v1878_v38 = vld [vmem:[#allocation3 + $0x28] sm:$0xff]   ;;  %v106_v39 = vld [vmem:[%s2790_s0 + $0x200] sm:$0xff] }
  0x5f   :  { %1009 = vmatpush1.bf16.msra.mxu0 %v1837_v48  ;;  %836 = vmatprep.mubr.bf16.mxu0 %v157_v49  ;;  %v1861_v48 = vld [vmem:[%s2791_s1 + $0x2b0] ss:$8 sps:$4 sm:$0xff]   ;;  %v181_v49 = vpack.c.bf16 %v133_v42, %v127_v41  ;;  %v119_v41 = vld [vmem:[%s2790_s0 + $0x268] sm:$0xff] }
  0x60   :  { %940 = vmatmul.mubr.bf16.gmra.mxu1 %v152_v50  ;;  %1010 = vmatprep.subr.bf16.mxu0 %v1842_v51  ;;  %v176_v50 = vpack.c.bf16 %v122_v44, %v116_v43  ;;  %v1866_v51 = vld [vmem:[%s2791_s1 + $0x2a4] ss:$8 sps:$4 sm:$0xff]   ;;  %v125_v42 = vld [vmem:[%s2790_s0 + $0x298] sm:$0xff] }
  0x61   :  { %949 = vmatprep.mubr.bf16.mxu1 %v159_v52  ;;  %v183_v52 = vpack.c.bf16 %v135_v47, %v129_v46  ;;  %v179_v44 = vpack.c.bf16 %v125_v42, %v119_v41  ;;  %v1880_v46 = vld [vmem:[#allocation3 + $0x20] sm:$0xff]  }
  0x62   :  { %v118_v47 = vld [vmem:[%s2790_s0 + $0x260] sm:$0xff] }
  0x63   :  { %1011 = vmatpush1.bf16.msra.mxu0 %v1840_v53  ;;  %v1864_v53 = vld [vmem:[%s2791_s1 + $0x2a0] ss:$8 sps:$4 sm:$0xff]  }
  0x64   :  { %1012 = vmatprep.subr.bf16.mxu0 %v1845_v56  ;;  %v1869_v56 = vld [vmem:[%s2791_s1 + $0x294] ss:$8 sps:$4 sm:$0xff]  }
  0x66   :  { %837 = vmatmul.mubr.bf16.gmra.mxu0 %v156_v61  ;;  %v180_v61 = vpack.c.bf16 %v132_v55, %v126_v54  ;;  %v1882_v54 = vld [vmem:[#allocation3 + $0x18] sm:$0xff]   ;;  %v130_v55 = vld [vmem:[%s2790_s0 + $0x2c0] sm:$0xff] }
  0x67   :  { %1013 = vmatpush1.bf16.msra.mxu0 %v1843_v0  ;;  %846 = vmatprep.mubr.bf16.mxu0 %v163_v1  ;;  %v182_v0 = vpack.c.bf16 %v134_v60, %v128_v59  ;;  %v1872_v1 = vld [vmem:[%s2791_s1 + $0x284] ss:$8 sps:$4 sm:$0xff]   ;;  %v1884_v59 = vld [vmem:[#allocation3 + $0x10] sm:$0xff]  }
  0x68   :  { %950 = vmatmul.mubr.bf16.gmra.mxu1 %v158_v2  ;;  %1014 = vmatprep.subr.bf16.mxu0 %v1848_v3  ;;  %v1870_v2 = vld [vmem:[%s2791_s1 + $0x280] ss:$8 sps:$4 sm:$0xff]  }
  0x69   :  { %959 = vmatprep.mubr.bf16.mxu1 %v165_v4  ;;  %v46_v3 = vld [vmem:[%s2790_s0 + $0x20] sm:$0xff]  ;;  %v52_v4 = vld [vmem:[%s2790_s0 + $0x50] sm:$0xff]  ;;  %v1885_v60 = vld [vmem:[#allocation3 + $0x48] sm:$0xff]  }
  0x6a   :  { %v142_v7 = vpack.c.bf16 %v52_v4, %v46_v3 }
  0x6b   :  { %1015 = vmatpush1.bf16.msra.mxu0 %v1846_v5  ;;  %v59_v5 = vld [vmem:[%s2790_s0 + $0x88] sm:$0xff] }
  0x6c   :  { %1016 = vmatprep.subr.bf16.mxu0 %v1851_v8  ;;  %v149_v8 = vpack.c.bf16 %v65_v6, %v59_v5 }
  0x6e   :  { %847 = vmatmul.mubr.bf16.gmra.mxu0 %v162_v13  ;;  %v148_v13 = vpack.c.bf16 %v64_v10, %v58_v9 }
  0x6f   :  { %1017 = vmatpush2.bf16.msra.mxu0 %v1849_v16  ;;  %856 = vmatprep.mubr.bf16.mxu0 %v169_v17  ;;  %v76_v16 = vld [vmem:[%s2790_s0 + $0x110] sm:$0xff]  ;;  %v83_v17 = vld [vmem:[%s2790_s0 + $0x148] sm:$0xff] }
  0x70   :  { %960 = vmatmul.mubr.bf16.gmra.mxu1 %v164_v18  ;;  %1018 = vmatprep.subr.bf16.mxu0 %v1854_v19  ;;  %v89_v18 = vld [vmem:[%s2790_s0 + $0x178] sm:$0xff]  ;;  %v154_v19 = vpack.c.bf16 %v76_v16, %v70_v15 }
  0x71   :  { %969 = vmatprep.mubr.bf16.mxu1 %v171_v23  ;;  %v82_v23 = vld [vmem:[%s2790_s0 + $0x140] sm:$0xff] }
  0x73   :  { %1019 = vmatpush2.bf16.msra.mxu0 %v1852_v20  ;;  %v161_v20 = vpack.c.bf16 %v89_v18, %v83_v17 }
  0x74   :  { %1020 = vmatprep.subr.bf16.mxu0 %v1857_v24  ;;  %v88_v24 = vld [vmem:[%s2790_s0 + $0x170] sm:$0xff] }
  0x75   :  { %v160_v27 = vpack.c.bf16 %v88_v24, %v82_v23 }
  0x76   :  { %857 = vmatmul.mubr.bf16.gmra.mxu0 %v168_v32  ;;  %v100_v32 = vld [vmem:[%s2790_s0 + $0x1d0] sm:$0xff] }
  0x77   :  { %1021 = vmatpush2.bf16.msra.mxu0 %v1855_v31  ;;  %866 = vmatprep.mubr.bf16.mxu0 %v175_v34  ;;  %v94_v31 = vld [vmem:[%s2790_s0 + $0x1a0] sm:$0xff]  ;;  %v113_v34 = vld [vmem:[%s2790_s0 + $0x238] sm:$0xff] }
  0x78   :  { %970 = vmatmul.mubr.bf16.gmra.mxu1 %v170_v35  ;;  %1022 = vmatprep.subr.bf16.mxu0 %v1860_v33  ;;  %v107_v33 = vld [vmem:[%s2790_s0 + $0x208] sm:$0xff]  ;;  %v166_v35 = vpack.c.bf16 %v100_v32, %v94_v31 }
  0x79   :  { %979 = vmatprep.mubr.bf16.mxu1 %v177_v36  ;;  %v173_v36 = vpack.c.bf16 %v113_v34, %v107_v33 }
  0x7b   :  { %1023 = vmatpush2.bf16.msra.mxu0 %v1858_v37  ;;  %v1877_v37 = vld [vmem:[#allocation3 + $0x68] sm:$0xff]  }
  0x7c   :  { %1024 = vmatprep.subr.bf16.mxu0 %v1863_v40  ;;  %v112_v40 = vld [vmem:[%s2790_s0 + $0x230] sm:$0xff]  ;;  %1612 = vmatprep.subr.bf16.mxu1 %v1877_v37  ;;  %v284_v37 = vlaneseq }
  0x7d   :  { %1613 = vmatpush3.bf16.msra.mxu1 %v1878_v38  ;;  %v172_v43 = vpack.c.bf16 %v112_v40, %v106_v39 }
  0x7e   :  { %867 = vmatmul.mubr.bf16.gmra.mxu0 %v174_v45  ;;  %v1879_v45 = vld [vmem:[#allocation3 + $0x60] sm:$0xff]   ;;  %v285_v41 = vshrl.u32 %v284_v37, 7 }
  0x7f   :  { %1025 = vmatpush2.bf16.msra.mxu0 %v1861_v48  ;;  %876 = vmatprep.mubr.bf16.mxu0 %v181_v49  ;;  %v124_v48 = vld [vmem:[%s2790_s0 + $0x290] sm:$0xff]  ;;  %v131_v49 = vld [vmem:[%s2790_s0 + $0x2c8] sm:$0xff] }
  0x80   :  { %980 = vmatmul.mubr.bf16.gmra.mxu1 %v176_v50  ;;  %1026 = vmatprep.subr.bf16.mxu0 %v1866_v51  ;;  %v137_v50 = vld [vmem:[%s2790_s0 + $0x2f8] sm:$0xff]  ;;  %v178_v51 = vpack.c.bf16 %v124_v48, %v118_v47  ;;  %v282_v48 = vld [vmem:[%s2792_s2] sm:$0x3] }
  0x81   :  { %989 = vmatprep.mubr.bf16.mxu1 %v183_v52  ;;  %1614 = vmatprep.subr.bf16.mxu1 %v1879_v45  ;;  %v185_v52 = vpack.c.bf16 %v137_v50, %v131_v49  ;;  %v290_v45 = vsub.s32 1, %v285_v41 }
  0x82   :  { %1615 = vmatpush3.bf16.msra.mxu1 %v1880_v46  ;;  %v286_v46 = vsub.s32 0, %v285_v41 }
  0x83   :  { %1027 = vmatpush2.bf16.msra.mxu0 %v1864_v53  ;;  %v1881_v53 = vld [vmem:[#allocation3 + $0x58] sm:$0xff]  }
  0x84   :  { %1028 = vmatprep.subr.bf16.mxu0 %v1869_v56  ;;  %v136_v56 = vld [vmem:[%s2790_s0 + $0x2f0] sm:$0xff]  ;;  %1616 = vmatprep.subr.bf16.mxu1 %v1881_v53 }
  0x85   :  { %v184_v57 = vpack.c.bf16 %v136_v56, %v130_v55 }
  0x86   :  { %877 = vmatmul.mubr.bf16.gmra.mxu0 %v180_v61  ;;  %1617 = vmatpush3.bf16.msra.mxu1 %v1882_v54  ;;  %v1886_v61 = vld [vmem:[#allocation3 + $0x8] sm:$0xff]  }
  0x87   :  { %1029 = vmatpush2.bf16.msra.mxu0 %v1867_v62  ;;  %1032 = vmatprep.mubr.bf16.mxu0 %v143_v63  ;;  %v1887_v62 = vld [vmem:[#allocation3 + $0x40] sm:$0xff]  }
  0x88   :  { %990 = vmatmul.mubr.bf16.gmra.mxu1 %v182_v0  ;;  %1030 = vmatprep.subr.bf16.mxu0 %v1872_v1  ;;  %v1888_v63 = vld [vmem:[#allocation3] sm:$0xff]  }
  0x89   :  { %1618 = vmatprep.subr.bf16.mxu1 %v1883_v58 }
  0x8a   :  { %1619 = vmatpush3.bf16.msra.mxu1 %v1884_v59 }
  0x8b   :  { %1031 = vmatpush2.bf16.msra.mxu0 %v1870_v2  ;;  %1620 = vmatprep.subr.bf16.mxu1 %v1885_v60 }
  0x8e   :  { %1033 = vmatmul.mubr.bf16.vlgmr.msra.gmra.mxu0 %v142_v7  ;;  %1621 = vmatpush3.bf16.msra.mxu1 %v1886_v61 }
  0x8f   :  { %1042 = vmatprep.mubr.bf16.mxu0 %v149_v8  ;;  %1622 = vmatprep.subr.bf16.mxu1 %v1887_v62 }
  0x92   :  { %1623 = vmatpush3.bf16.msra.mxu1 %v1888_v63 }
  0x96   :  { %1043 = vmatmul.mubr.bf16.gmra.mxu0 %v148_v13 }
  0x97   :  { %1052 = vmatprep.mubr.bf16.mxu0 %v155_v14 }
  0x9e   :  { %1053 = vmatmul.mubr.bf16.gmra.mxu0 %v154_v19 }
  0x9f   :  { %1062 = vmatprep.mubr.bf16.mxu0 %v161_v20 }
  0xa6   :  { %1063 = vmatmul.mubr.bf16.gmra.mxu0 %v160_v27 }
  0xa7   :  { %1072 = vmatprep.mubr.bf16.mxu0 %v167_v28 }
  0xae   :  { %1073 = vmatmul.mubr.bf16.gmra.mxu0 %v166_v35 }
  0xaf   :  { %1082 = vmatprep.mubr.bf16.mxu0 %v173_v36 }
  0xb6   :  { %1083 = vmatmul.mubr.bf16.gmra.mxu0 %v172_v43 }
  0xb7   :  { %1092 = vmatprep.mubr.bf16.mxu0 %v179_v44 }
  0xbe   :  { %1093 = vmatmul.mubr.bf16.gmra.mxu0 %v178_v51  ;;  %v2620_v51 = vrot.slane %v282_v48, %v290_v45 }
  0xbf   :  { %1102 = vmatprep.mubr.bf16.mxu0 %v185_v52  ;;  %v2622_v52 = vrot.slane %v282_v48, %v286_v46 }
  0xc6   :  { %1103 = vmatmul.mubr.bf16.gmra.mxu0 %v184_v57 }
 0x10e   :  { %v808_v0 = vpop.f32.mrf.mxu0 }
 0x10f   :  { %v809_v58 = vadd.f32 %v808_v0, %v2622_v52 }
 0x110   :  { %v810_v1 = vpop.f32.mrf.mxu0  ;;  %v2539_v2 = vpop.f32.mrf.mxu1 }
 0x111   :  { %v811_v56 = vadd.f32 %v810_v1, %v2620_v51  ;;  %v922_v41 = vadd.f32 %v2539_v2, %v809_v58 }
 0x112   :  { %v812_v3 = vpop.f32.mrf.mxu0  ;;  %v923_v4 = vpop.f32.mrf.mxu1 }
 0x113   :  { %v813_v57 = vadd.f32 %v812_v3, %v2622_v52  ;;  %v924_v63 = vadd.f32 %v923_v4, %v811_v56 }
 0x114   :  { %v814_v5 = vpop.f32.mrf.mxu0  ;;  %v925_v6 = vpop.f32.mrf.mxu1 }
 0x115   :  { %v815_v60 = vadd.f32 %v814_v5, %v2620_v51  ;;  %v926_v37 = vadd.f32 %v925_v6, %v813_v57 }
 0x116   :  { %v2541_v7 = vpop.f32.mrf.mxu0  ;;  %v927_v8 = vpop.f32.mrf.mxu1 }
 0x117   :  { %v928_v46 = vadd.f32 %v927_v8, %v815_v60  ;;  %v819_v4 = vadd.f32 %v2541_v7, %v2622_v52 }
 0x118   :  { %v2543_v9 = vpop.f32.mrf.mxu0  ;;  %v2547_v11 = vpop.f32.mrf.mxu1 }
 0x119   :  { %v821_v0 = vadd.f32 %v2543_v9, %v2620_v51 }
 0x11a   :  { %v2545_v10 = vpop.f32.mrf.mxu0  ;;  %v2553_v14 = vpop.f32.mrf.mxu1 }
 0x11b   :  { %v823_v5 = vadd.f32 %v2545_v10, %v2622_v52  ;;  %v934_v9 = vadd.f32 %v2553_v14, %v821_v0 }
 0x11c   :  { %v2549_v12 = vpop.f32.mrf.mxu0  ;;  %v2559_v17 = vpop.f32.mrf.mxu1 }
 0x11d   :  { %v825_v8 = vadd.f32 %v2549_v12, %v2620_v51 }
 0x11e   :  { %v2551_v13 = vpop.f32.mrf.mxu0  ;;  %v2565_v20 = vpop.f32.mrf.mxu1 }
 0x120   :  { %v2555_v15 = vpop.f32.mrf.mxu0  ;;  %v2571_v23 = vpop.f32.mrf.mxu1 }
 0x121   :  { %v831_v14 = vadd.f32 %v2555_v15, %v2620_v51 }
 0x122   :  { %v2557_v16 = vpop.f32.mrf.mxu0  ;;  %v2577_v26 = vpop.f32.mrf.mxu1 }
 0x123   :  { %v944_v15 = vadd.f32 %v2577_v26, %v831_v14 }
 0x124   :  { %v2561_v18 = vpop.f32.mrf.mxu0  ;;  %v2583_v29 = vpop.f32.mrf.mxu1 }
 0x126   :  { %v2563_v19 = vpop.f32.mrf.mxu0  ;;  %v2589_v32 = vpop.f32.mrf.mxu1 }
 0x128   :  { %v2567_v21 = vpop.f32.mrf.mxu0  ;;  %v2595_v35 = vpop.f32.mrf.mxu1 }
 0x129   :  { %v841_v26 = vadd.f32 %v2567_v21, %v2620_v51 }
 0x12a   :  { %v2569_v22 = vpop.f32.mrf.mxu0  ;;  %v2601_v39 = vpop.f32.mrf.mxu1 }
 0x12b   :  { %v954_v14 = vadd.f32 %v2601_v39, %v841_v26 }
 0x12c   :  { %v2573_v24 = vpop.f32.mrf.mxu0  ;;  %v2607_v43 = vpop.f32.mrf.mxu1 }
 0x12e   :  { %v2575_v25 = vpop.f32.mrf.mxu0  ;;  %v2616_v49 = vpop.f32.mrf.mxu1 }
 0x130   :  { %v2579_v27 = vpop.f32.mrf.mxu0  ;;  %v2626_v54 = vpop.f32.mrf.mxu1 }
 0x131   :  { %v851_v39 = vadd.f32 %v2579_v27, %v2620_v51 }
 0x132   :  { %v2581_v28 = vpop.f32.mrf.mxu0  ;;  %v2634_v61 = vpop.f32.mrf.mxu1 }
 0x134   :  { %v2585_v30 = vpop.f32.mrf.mxu0 }
 0x136   :  { %v2587_v31 = vpop.f32.mrf.mxu0 }
 0x138   :  { %v2591_v33 = vpop.f32.mrf.mxu0 }
 0x13a   :  { %v2593_v34 = vpop.f32.mrf.mxu0 }
 0x13c   :  { %v2597_v36 = vpop.f32.mrf.mxu0 }
 0x13e   :  { %v2599_v38 = vpop.f32.mrf.mxu0 }
 0x140   :  { %v2603_v40 = vpop.f32.mrf.mxu0 }
 0x142   :  { %v2605_v42 = vpop.f32.mrf.mxu0 }
 0x144   :  { %v2609_v44 = vpop.f32.mrf.mxu0 }
 0x146   :  { %v2611_v47 = vpop.f32.mrf.mxu0 }
 0x147   :  { %2798 = vst [vmem:[#allocation6_spill] sm:$0xff] %v2611_v47  ;;  %v2637_v47 = vpop.f32.mrf.mxu1 }
 0x148   :  { %v2618_v50 = vpop.f32.mrf.mxu0 }
 0x149   :  { %v2647_v58 = vpop.f32.mrf.mxu1 }
 0x14a   :  { %v2624_v53 = vpop.f32.mrf.mxu0 }
 0x14b   :  { %2799 = vst [vmem:[#allocation7_spill] sm:$0xff] %v2624_v53  ;;  %v2653_v12 = vpop.f32.mrf.mxu1 }
 0x14c   :  { %v2628_v55 = vpop.f32.mrf.mxu0 }
 0x14d   :  { %2800 = vst [vmem:[#allocation8_spill] sm:$0xff] %v2628_v55 }
 0x14e   :  { %v1034_v59 = vpop.f32.mrf.mxu0 }
 0x14f   :  { %v1035_v1 = vadd.f32 %v1034_v59, %v922_v41 }
 0x150   :  { %v1036_v62 = vpop.f32.mrf.mxu0 }
 0x151   :  { %v1037_v48 = vadd.f32 %v1036_v62, %v924_v63  ;;  %v1113_v59 = vmax.f32 %v1035_v1, 0.0  ;;  %v936_v62 = vadd.f32 %v2559_v17, %v823_v5  ;;  %v932_v63 = vadd.f32 %v2547_v11, %v819_v4  ;;  %v2663_v4 = vpop.f32.mrf.mxu1 }
 0x152   :  { %v1038_v45 = vpop.f32.mrf.mxu0  ;;  %v833_v17 = vadd.f32 %v2557_v16, %v2622_v52  ;;  %v829_v11 = vadd.f32 %v2551_v13, %v2622_v52 }
 0x153   :  { %v1039_v55 = vadd.f32 %v1038_v45, %v926_v37  ;;  %v1114_v56 = vmax.f32 %v1037_v48, 0.0 }
 0x154   :  { %v1040_v3 = vpop.f32.mrf.mxu0 }
 0x155   :  { %v1041_v53 = vadd.f32 %v1040_v3, %v928_v46  ;;  %v1115_v6 = vmax.f32 %v1039_v55, 0.0  ;;  %v938_v55 = vadd.f32 %v2565_v20, %v825_v8  ;;  %v835_v3 = vadd.f32 %v2561_v18, %v2620_v51  ;;  %v2669_v18 = vpop.f32.mrf.mxu1 }
 0x156   :  { %v1044_v2 = vpop.f32.mrf.mxu0  ;;  %v946_v8 = vadd.f32 %v2583_v29, %v833_v17  ;;  %v843_v29 = vadd.f32 %v2569_v22, %v2622_v52 }
 0x157   :  { %v1116_v57 = vmax.f32 %v1041_v53, 0.0  ;;  %v1145_v37 = vpack.c.bf16 %v1115_v6, %v1113_v59  ;;  %v1045_v53 = vadd.f32 %v1044_v2, %v932_v63  ;;  %v948_v59 = vadd.f32 %v2589_v32, %v835_v3 }
 0x158   :  { %v1046_v60 = vpop.f32.mrf.mxu0  ;;  %v956_v21 = vadd.f32 %v2607_v43, %v843_v29  ;;  %v853_v43 = vadd.f32 %v2581_v28, %v2622_v52 }
 0x159   :  { %v1146_v10 = vpack.c.bf16 %v1116_v57, %v1114_v56  ;;  %v1047_v41 = vadd.f32 %v1046_v60, %v934_v9  ;;  %v1117_v6 = vmax.f32 %v1045_v53, 0.0  ;;  %v942_v56 = vadd.f32 %v2571_v23, %v829_v11 }
 0x15a   :  { %v1048_v7 = vpop.f32.mrf.mxu0  ;;  %v839_v23 = vadd.f32 %v2563_v19, %v2622_v52  ;;  %v966_v27 = vadd.f32 %v2637_v47, %v853_v43  ;;  %v863_v47 = vadd.f32 %v2593_v34, %v2622_v52 }
 0x15b   :  { %v1049_v45 = vadd.f32 %v1048_v7, %v936_v62  ;;  %1328 = vmatprep.mubr.bf16.mxu1 %v1146_v10  ;;  %v1118_v0 = vmax.f32 %v1047_v41, 0.0  ;;  %v845_v7 = vadd.f32 %v2573_v24, %v2620_v51 }
 0x15c   :  { %v1050_v46 = vpop.f32.mrf.mxu0  ;;  %1329 = vmatmul.mubr.bf16.vlgmr.msra.gmra.mxu1 %v1145_v37  ;;  %v952_v22 = vadd.f32 %v2595_v35, %v839_v23  ;;  %v849_v35 = vadd.f32 %v2575_v25, %v2622_v52 }
 0x15d   :  { %v1051_v48 = vadd.f32 %v1050_v46, %v938_v55  ;;  %v1119_v1 = vmax.f32 %v1049_v45, 0.0  ;;  %v977_v45 = vpop.f32.mrf.mxu1  ;;  %v958_v19 = vadd.f32 %v2616_v49, %v845_v7 }
 0x15e   :  { %v1054_v20 = vpop.f32.mrf.mxu0  ;;  %v962_v28 = vadd.f32 %v2626_v54, %v849_v35  ;;  %v859_v54 = vadd.f32 %v2587_v31, %v2622_v52 }
 0x15f   :  { %v1120_v5 = vmax.f32 %v1051_v48, 0.0  ;;  %v1147_v57 = vpack.c.bf16 %v1119_v1, %v1117_v6  ;;  %v1055_v62 = vadd.f32 %v1054_v20, %v942_v56  ;;  %v2683_v24 = vpop.f32.mrf.mxu1 }
 0x160   :  { %v1056_v2 = vpop.f32.mrf.mxu0  ;;  %v972_v34 = vadd.f32 %v2653_v12, %v859_v54  ;;  %v869_v12 = vadd.f32 %v2599_v38, %v2622_v52 }
 0x161   :  { %v1148_v16 = vpack.c.bf16 %v1120_v5, %v1118_v0  ;;  %v1057_v60 = vadd.f32 %v1056_v2, %v944_v15  ;;  %v1121_v53 = vmax.f32 %v1055_v62, 0.0  ;;  %v855_v2 = vadd.f32 %v2585_v30, %v2620_v51 }
 0x162   :  { %v1058_v13 = vpop.f32.mrf.mxu0 }
 0x163   :  { %v1059_v9 = vadd.f32 %v1058_v13, %v946_v8  ;;  %1336 = vmatprep.mubr.bf16.mxu1 %v1148_v16  ;;  %v1122_v55 = vmax.f32 %v1057_v60, 0.0  ;;  %v983_v16 = vpop.f32.mrf.mxu1  ;;  %v964_v13 = vadd.f32 %v2634_v61, %v851_v39  ;;  %v968_v25 = vadd.f32 %v2647_v58, %v855_v2 }
 0x164   :  { %v1060_v10 = vpop.f32.mrf.mxu0  ;;  %1337 = vmatmul.mubr.bf16.gmra.mxu1 %v1147_v57  ;;  %v865_v58 = vadd.f32 %v2597_v36, %v2620_v51  ;;  %v982_v2 = vadd.f32 %v2683_v24, %v869_v12 }
 0x165   :  { %v1061_v63 = vadd.f32 %v1060_v10, %v948_v59  ;;  %v1123_v37 = vmax.f32 %v1059_v9, 0.0  ;;  %v985_v30 = vpop.f32.mrf.mxu1 }
 0x166   :  { %v1064_v32 = vpop.f32.mrf.mxu0  ;;  %v978_v31 = vadd.f32 %v977_v45, %v865_v58  ;;  %v875_v45 = vadd.f32 %v2609_v44, %v2620_v51  ;;  %v881_v44 = vadd.f32 %v2618_v50, %v2620_v51 }
 0x167   :  { %v1124_v41 = vmax.f32 %v1061_v63, 0.0  ;;  %v1149_v48 = vpack.c.bf16 %v1123_v37, %v1121_v53  ;;  %v1065_v3 = vadd.f32 %v1064_v32, %v952_v22  ;;  %v861_v63 = vadd.f32 %v2591_v33, %v2620_v51 }
 0x168   :  { %v1066_v46 = vpop.f32.mrf.mxu0  ;;  %v976_v33 = vadd.f32 %v2669_v18, %v863_v47 }
 0x169   :  { %v1150_v17 = vpack.c.bf16 %v1124_v41, %v1122_v55  ;;  %v1067_v1 = vadd.f32 %v1066_v46, %v954_v14  ;;  %v1125_v56 = vmax.f32 %v1065_v3, 0.0  ;;  %v987_v55 = vpop.f32.mrf.mxu1  ;;  %v974_v46 = vadd.f32 %v2663_v4, %v861_v63 }
 0x16a   :  { %v1068_v11 = vpop.f32.mrf.mxu0  ;;  %v873_v4 = vadd.f32 %v2605_v42, %v2622_v52 }
 0x16b   :  { %v1069_v20 = vadd.f32 %v1068_v11, %v956_v21  ;;  %1344 = vmatprep.mubr.bf16.mxu1 %v1150_v17  ;;  %v1126_v15 = vmax.f32 %v1067_v1, 0.0  ;;  %v991_v11 = vpop.f32.mrf.mxu1  ;;  %v871_v1 = vadd.f32 %v2603_v40, %v2620_v51 }
 0x16c   :  { %v1070_v0 = vpop.f32.mrf.mxu0  ;;  %1345 = vmatmul.mubr.bf16.gmra.mxu1 %v1149_v48 }
 0x16d   :  { %v1071_v5 = vadd.f32 %v1070_v0, %v958_v19  ;;  %v1127_v6 = vmax.f32 %v1069_v20, 0.0  ;;  %v993_v43 = vpop.f32.mrf.mxu1 }
 0x16e   :  { %v1074_v49 = vpop.f32.mrf.mxu0 }
 0x16f   :  { %v1128_v8 = vmax.f32 %v1071_v5, 0.0  ;;  %v1151_v60 = vpack.c.bf16 %v1127_v6, %v1125_v56  ;;  %v1075_v26 = vadd.f32 %v1074_v49, %v962_v28  ;;  %v984_v6 = vadd.f32 %v983_v16, %v871_v1 }
 0x170   :  { %v1076_v57 = vpop.f32.mrf.mxu0  ;;  %v986_v49 = vadd.f32 %v985_v30, %v873_v4 }
 0x171   :  { %v1152_v59 = vpack.c.bf16 %v1128_v8, %v1126_v15  ;;  %v1077_v62 = vadd.f32 %v1076_v57, %v964_v13  ;;  %v1129_v41 = vmax.f32 %v1075_v26, 0.0  ;;  %v988_v8 = vadd.f32 %v987_v55, %v875_v45  ;;  %v995_v57 = vpop.f32.mrf.mxu1 }
 0x172   :  { %v1078_v9 = vpop.f32.mrf.mxu0 }
 0x173   :  { %v1079_v10 = vadd.f32 %v1078_v9, %v966_v27  ;;  %1352 = vmatprep.mubr.bf16.mxu1 %v1152_v59  ;;  %v1130_v32 = vmax.f32 %v1077_v62, 0.0  ;;  %v2801_v59 = vld [vmem:[#allocation7_spill] sm:$0xff]  ;;  %v2803_v62 = vld [vmem:[#allocation8_spill] sm:$0xff] }
 0x174   :  { %v1080_v29 = vpop.f32.mrf.mxu0  ;;  %1353 = vmatmul.mubr.bf16.gmra.mxu1 %v1151_v60  ;;  %v883_v16 = vadd.f32 %v2801_v59, %v2622_v52  ;;  %v2802_v60 = vld [vmem:[#allocation6_spill] sm:$0xff] }
 0x175   :  { %v1081_v61 = vadd.f32 %v1080_v29, %v968_v25  ;;  %v1131_v23 = vmax.f32 %v1079_v10, 0.0  ;;  %v879_v24 = vadd.f32 %v2802_v60, %v2622_v52  ;;  %v885_v10 = vadd.f32 %v2803_v62, %v2620_v51  ;;  %v997_v29 = vpop.f32.mrf.mxu1 }
 0x176   :  { %v1084_v37 = vpop.f32.mrf.mxu0  ;;  %v996_v54 = vadd.f32 %v995_v57, %v883_v16 }
 0x177   :  { %v1132_v7 = vmax.f32 %v1081_v61, 0.0  ;;  %v1153_v21 = vpack.c.bf16 %v1131_v23, %v1129_v41  ;;  %v1085_v36 = vadd.f32 %v1084_v37, %v972_v34  ;;  %v994_v61 = vadd.f32 %v993_v43, %v881_v44 }
 0x178   :  { %v1086_v53 = vpop.f32.mrf.mxu0  ;;  %v992_v23 = vadd.f32 %v991_v11, %v879_v24 }
 0x179   :  { %v1154_v14 = vpack.c.bf16 %v1132_v7, %v1130_v32  ;;  %v1087_v22 = vadd.f32 %v1086_v53, %v974_v46  ;;  %v1133_v5 = vmax.f32 %v1085_v36, 0.0  ;;  %v998_v32 = vadd.f32 %v997_v29, %v885_v10  ;;  %v2742_v29 = vld [vmem:[%s2794_s4] ss:$0 sm:$0xff] }
 0x17a   :  { %v1088_v17 = vpop.f32.mrf.mxu0 }
 0x17b   :  { %v1089_v48 = vadd.f32 %v1088_v17, %v976_v33  ;;  %1360 = vmatprep.mubr.bf16.mxu1 %v1154_v14  ;;  %v1134_v0 = vmax.f32 %v1087_v22, 0.0  ;;  %v1918_v17 = vmov 0.0  }
 0x17c   :  { %v1090_v19 = vpop.f32.mrf.mxu0  ;;  %1361 = vmatmul.mubr.bf16.gmra.mxu1 %v1153_v21  ;;  %1689 = vmatprep.subr.mxu0 %v1918_v17 }
 0x17d   :  { %v1091_v18 = vadd.f32 %v1090_v19, %v978_v31  ;;  %v1135_v20 = vmax.f32 %v1089_v48, 0.0  ;;  %1721 = vmatprep.mubr.msk.f32.mxu0 %vm1919_vm0, %v1918_v17 }
 0x17e   :  { %v1094_v3 = vpop.f32.mrf.mxu0 }
 0x17f   :  { %v1136_v39 = vmax.f32 %v1091_v18, 0.0  ;;  %v1155_v42 = vpack.c.bf16 %v1135_v20, %v1133_v5  ;;  %v1095_v13 = vadd.f32 %v1094_v3, %v982_v2 }
 0x180   :  { %v1096_v35 = vpop.f32.mrf.mxu0 }
 0x181   :  { %v1156_v40 = vpack.c.bf16 %v1136_v39, %v1134_v0  ;;  %v1097_v56 = vadd.f32 %v1096_v35, %v984_v6  ;;  %v1137_v63 = vmax.f32 %v1095_v13, 0.0 }
 0x182   :  { %v1098_v15 = vpop.f32.mrf.mxu0 }
 0x183   :  { %v1099_v38 = vadd.f32 %v1098_v15, %v986_v49  ;;  %1368 = vmatprep.mubr.bf16.mxu1 %v1156_v40  ;;  %v1138_v30 = vmax.f32 %v1097_v56, 0.0 }
 0x184   :  { %v1100_v27 = vpop.f32.mrf.mxu0  ;;  %1369 = vmatmul.mubr.bf16.gmra.mxu1 %v1155_v42 }
 0x185   :  { %v1101_v28 = vadd.f32 %v1100_v27, %v988_v8  ;;  %v1139_v9 = vmax.f32 %v1099_v38, 0.0 }
 0x186   :  { %v1104_v25 = vpop.f32.mrf.mxu0 }
 0x187   :  { %v1140_v26 = vmax.f32 %v1101_v28, 0.0  ;;  %v1157_v37 = vpack.c.bf16 %v1139_v9, %v1137_v63  ;;  %v1105_v52 = vadd.f32 %v1104_v25, %v992_v23 }
 0x188   :  { %v1106_v47 = vpop.f32.mrf.mxu0 }
 0x189   :  { %v1158_v50 = vpack.c.bf16 %v1140_v26, %v1138_v30  ;;  %v1107_v7 = vadd.f32 %v1106_v47, %v994_v61  ;;  %v1141_v14 = vmax.f32 %v1105_v52, 0.0 }
 0x18a   :  { %v1108_v58 = vpop.f32.mrf.mxu0 }
 0x18b   :  { %v1109_v55 = vadd.f32 %v1108_v58, %v996_v54  ;;  %1376 = vmatprep.mubr.bf16.mxu1 %v1158_v50  ;;  %v1142_v46 = vmax.f32 %v1107_v7, 0.0 }
 0x18c   :  { %v1110_v41 = vpop.f32.mrf.mxu0  ;;  %1377 = vmatmul.mubr.bf16.gmra.mxu1 %v1157_v37 }
 0x18d   :  { %v1111_v53 = vadd.f32 %v1110_v41, %v998_v32  ;;  %v1143_v51 = vmax.f32 %v1109_v55, 0.0 }
 0x18f   :  { %v1144_v33 = vmax.f32 %v1111_v53, 0.0  ;;  %v1159_v21 = vpack.c.bf16 %v1143_v51, %v1141_v14 }
 0x191   :  { %v1160_v34 = vpack.c.bf16 %v1144_v33, %v1142_v46 }
 0x193   :  { %1384 = vmatprep.mubr.bf16.mxu1 %v1160_v34 }
 0x194   :  { %1385 = vmatmul.mubr.bf16.gmra.mxu1 %v1159_v21 }
 0x21c   :  { %v1624_v31 = vpop.f32.mrf.mxu1 }
 0x21e   :  { %v1625_v22 = vpop.f32.mrf.mxu1 }
 0x21f   :  { %v2727_v48 = vadd.f32 %v1625_v22, %v1624_v31 }
 0x220   :  { %v1627_v11 = vpop.f32.mrf.mxu1 }
 0x222   :  { %v1628_v36 = vpop.f32.mrf.mxu1 }
 0x223   :  { %v2729_v19 = vadd.f32 %v1628_v36, %v1627_v11 }
 0x224   :  { %v1630_v1 = vpop.f32.mrf.mxu1 }
 0x226   :  { %v1631_v4 = vpop.f32.mrf.mxu1 }
 0x227   :  { %v2731_v18 = vadd.f32 %v1631_v4, %v1630_v1 }
 0x228   :  { %v1633_v12 = vpop.f32.mrf.mxu1 }
 0x22a   :  { %v1634_v20 = vpop.f32.mrf.mxu1 }
 0x22b   :  { %v2733_v3 = vadd.f32 %v1634_v20, %v1633_v12 }
 0x22c   :  { %v1636_v45 = vpop.f32.mrf.mxu1 }
 0x22e   :  { %v1637_v0 = vpop.f32.mrf.mxu1 }
 0x22f   :  { %v2735_v39 = vadd.f32 %v1637_v0, %v1636_v45  ;;  %v1342_v0 = vadd.f32 %v2733_v3, %v2742_v29  ;;  %v1331_v3 = vadd.f32 %v2727_v48, %v2742_v29 }
 0x230   :  { %v1639_v43 = vpop.f32.mrf.mxu1 }
 0x231   :  { %v1347_v20 = vadd.f32 %v2735_v39, %v2742_v29  ;;  %v1334_v39 = vadd.f32 %v2729_v19, %v2742_v29  ;;  %v1411_v19 = vstv %s2796_s6 }
 0x232   :  { %v1640_v5 = vpop.f32.mrf.mxu1 }
 0x233   :  { %v2737_v35 = vadd.f32 %v1640_v5, %v1639_v43  ;;  %v1397_v43 = vmax.f32 %v1347_v20, 0.0  ;;  %v1339_v5 = vadd.f32 %v2731_v18, %v2742_v29  ;;  %v1409_v18 = vld [vmem:[%s2795_s5] sm:$0x1] }
 0x234   :  { %v1642_v6 = vpop.f32.mrf.mxu1 }
 0x235   :  { %v1350_v4 = vadd.f32 %v2737_v35, %v2742_v29  ;;  %v1396_v35 = vmax.f32 %v1342_v0, 0.0 }
 0x236   :  { %v1643_v49 = vpop.f32.mrf.mxu1 }
 0x237   :  { %v1644_v40 = vadd.f32 %v1643_v49, %v1642_v6  ;;  %v1398_v45 = vmax.f32 %v1350_v4, 0.0  ;;  %v1395_v6 = vmax.f32 %v1339_v5, 0.0  ;;  %v1394_v49 = vmax.f32 %v1334_v39, 0.0 }
 0x238   :  { %v1645_v2 = vpop.f32.mrf.mxu1 }
 0x239   :  { %v1355_v36 = vadd.f32 %v1644_v40, %v2742_v29  ;;  %v1393_v40 = vmax.f32 %v1331_v3, 0.0 }
 0x23a   :  { %v1646_v42 = vpop.f32.mrf.mxu1 }
 0x23b   :  { %v1647_v15 = vadd.f32 %v1646_v42, %v1645_v2  ;;  %v1399_v12 = vmax.f32 %v1355_v36, 0.0 }
 0x23c   :  { %v1648_v8 = vpop.f32.mrf.mxu1 }
 0x23d   :  { %v1358_v22 = vadd.f32 %v1647_v15, %v2742_v29 }
 0x23e   :  { %v1649_v56 = vpop.f32.mrf.mxu1 }
 0x23f   :  { %v1650_v33 = vadd.f32 %v1649_v56, %v1648_v8  ;;  %v1400_v1 = vmax.f32 %v1358_v22, 0.0 }
 0x240   :  { %v1651_v38 = vpop.f32.mrf.mxu1 }
 0x241   :  { %v1363_v21 = vadd.f32 %v1650_v33, %v2742_v29 }
 0x242   :  { %v1652_v57 = vpop.f32.mrf.mxu1 }
 0x243   :  { %v1653_v53 = vadd.f32 %v1652_v57, %v1651_v38  ;;  %v1401_v11 = vmax.f32 %v1363_v21, 0.0 }
 0x244   :  { %v1654_v13 = vpop.f32.mrf.mxu1 }
 0x245   :  { %v1366_v14 = vadd.f32 %v1653_v53, %v2742_v29 }
 0x246   :  { %v1655_v27 = vpop.f32.mrf.mxu1 }
 0x247   :  { %v1656_v55 = vadd.f32 %v1655_v27, %v1654_v13  ;;  %v1402_v31 = vmax.f32 %v1366_v14, 0.0 }
 0x248   :  { %v1657_v44 = vpop.f32.mrf.mxu1 }
 0x249   :  { %v1371_v51 = vadd.f32 %v1656_v55, %v2742_v29 }
 0x24a   :  { %v1658_v59 = vpop.f32.mrf.mxu1 }
 0x24b   :  { %v1659_v58 = vadd.f32 %v1658_v59, %v1657_v44  ;;  %v1403_v34 = vmax.f32 %v1371_v51, 0.0 }
 0x24c   :  { %v1660_v16 = vpop.f32.mrf.mxu1 }
 0x24d   :  { %v1374_v52 = vadd.f32 %v1659_v58, %v2742_v29 }
 0x24e   :  { %v1661_v28 = vpop.f32.mrf.mxu1 }
 0x24f   :  { %v1662_v50 = vadd.f32 %v1661_v28, %v1660_v16  ;;  %v1404_v46 = vmax.f32 %v1374_v52, 0.0 }
 0x250   :  { %v1663_v60 = vpop.f32.mrf.mxu1 }
 0x251   :  { %v1379_v32 = vadd.f32 %v1662_v50, %v2742_v29 }
 0x252   :  { %v1664_v24 = vpop.f32.mrf.mxu1 }
 0x253   :  { %v1665_v47 = vadd.f32 %v1664_v24, %v1663_v60  ;;  %v1405_v41 = vmax.f32 %v1379_v32, 0.0 }
 0x254   :  { %v1666_v9 = vpop.f32.mrf.mxu1 }
 0x255   :  { %v1382_v23 = vadd.f32 %v1665_v47, %v2742_v29 }
 0x256   :  { %v1667_v25 = vpop.f32.mrf.mxu1 }
 0x257   :  { %v1668_v30 = vadd.f32 %v1667_v25, %v1666_v9  ;;  %v1406_v7 = vmax.f32 %v1382_v23, 0.0 }
 0x258   :  { %v1669_v62 = vpop.f32.mrf.mxu1 }
 0x259   :  { %v1387_v61 = vadd.f32 %v1668_v30, %v2742_v29 }
 0x25a   :  { %v1670_v10 = vpop.f32.mrf.mxu1 }
 0x25b   :  { %v1671_v26 = vadd.f32 %v1670_v10, %v1669_v62  ;;  %v1407_v37 = vmax.f32 %v1387_v61, 0.0 }
 0x25d   :  { %v1390_v63 = vadd.f32 %v1671_v26, %v2742_v29 }
 0x25f   :  { %v1408_v54 = vmax.f32 %v1390_v63, 0.0 }
 0x261   :  { %1690 = vmatpush3.xpose.msra.mxu0 %v1408_v54 }
 0x262   :  { %1691 = vmatprep.subr.mxu0 %v1918_v17 }
 0x265   :  { %1692 = vmatpush3.xpose.msra.mxu0 %v1407_v37 }
 0x266   :  { %1693 = vmatprep.subr.mxu0 %v1918_v17 }
 0x269   :  { %1694 = vmatpush3.xpose.msra.mxu0 %v1406_v7 }
 0x26a   :  { %1695 = vmatprep.subr.mxu0 %v1918_v17 }
 0x26d   :  { %1696 = vmatpush3.xpose.msra.mxu0 %v1405_v41 }
 0x26e   :  { %1697 = vmatprep.subr.mxu0 %v1918_v17 }
 0x271   :  { %1698 = vmatpush3.xpose.msra.mxu0 %v1404_v46 }
 0x272   :  { %1699 = vmatprep.subr.mxu0 %v1918_v17 }
 0x275   :  { %1700 = vmatpush3.xpose.msra.mxu0 %v1403_v34 }
 0x276   :  { %1701 = vmatprep.subr.mxu0 %v1918_v17 }
 0x279   :  { %1702 = vmatpush3.xpose.msra.mxu0 %v1402_v31 }
 0x27a   :  { %1703 = vmatprep.subr.mxu0 %v1918_v17 }
 0x27d   :  { %1704 = vmatpush3.xpose.msra.mxu0 %v1401_v11 }
 0x27e   :  { %1705 = vmatprep.subr.mxu0 %v1918_v17 }
 0x281   :  { %1706 = vmatpush3.xpose.msra.mxu0 %v1400_v1 }
 0x282   :  { %1707 = vmatprep.subr.mxu0 %v1918_v17 }
 0x285   :  { %1708 = vmatpush3.xpose.msra.mxu0 %v1399_v12 }
 0x286   :  { %1709 = vmatprep.subr.mxu0 %v1918_v17 }
 0x289   :  { %1710 = vmatpush3.xpose.msra.mxu0 %v1398_v45 }
 0x28a   :  { %1711 = vmatprep.subr.mxu0 %v1918_v17 }
 0x28d   :  { %1712 = vmatpush3.xpose.msra.mxu0 %v1397_v43 }
 0x28e   :  { %1713 = vmatprep.subr.mxu0 %v1918_v17 }
 0x291   :  { %1714 = vmatpush3.xpose.msra.mxu0 %v1396_v35 }
 0x292   :  { %1715 = vmatprep.subr.mxu0 %v1918_v17 }
 0x295   :  { %1716 = vmatpush3.xpose.msra.mxu0 %v1395_v6 }
 0x296   :  { %1717 = vmatprep.subr.mxu0 %v1918_v17 }
 0x299   :  { %1718 = vmatpush3.xpose.msra.mxu0 %v1394_v49 }
 0x29a   :  { %1719 = vmatprep.subr.mxu0 %v1918_v17 }
 0x29d   :  { %1720 = vmatpush3.xpose.msra.mxu0 %v1393_v40 }
 0x2a0   :  { %1722 = vmatmul.mubr.f32.vlgmr.msra.gmra.mxu0 %v1409_v18 }
 0x360   :  { %v1478_v2 = vpop.f32.mrf.mxu0 }
 0x361   :  { %v1479_v42 = vadd.f32 %v1478_v2, %v1411_v19 }
 0x362   :  { %v1723_v15 = vpop.f32.mrf.mxu0 }
 0x363   :  { %v1607_v8 = vmul.f32 -1.442695, %v1479_v42 }
 0x365   :  { %1889 = vpow2.f32 %v1607_v8 }
 0x372   :  { %v1890_v48 = vpop.eup %1889 }
 0x373   :  { %v1485_v56 = vadd.f32 1.0, %v1890_v48 }
 0x375   :  { %1891 = vrcp.f32 %v1485_v56 }
 0x382   :  { %v1892_v17 = vpop.eup %1891 }
 0x383   :  { %1488 = vst [vmem:[%s2797_s7] sm:$0x1] %v1892_v17 }
 0x384   :  { %1493 = vsyncpa [#allocation4], 1 }

</bundles_post_ra>
